<compile_context>
chip_gen: v7x
topology: tpu7x:2x2x1
jax: 0.10.0
libtpu: 0.0.40
codegen_flags: <defaults>
</compile_context>

<pallas_src>
import math
import functools
import numpy as np

import jax
import jax.numpy as jnp
from jax import lax
from jax.experimental import pallas as pl
from jax.experimental.pallas import tpu as pltpu

F32_MIN = float(np.finfo(np.float32).min)
LN_EPS = 1e-5
CLAMP = 65504.0


# ---------------------------------------------------------------------------
# RelPositionalEncoding.forward  ->  (x * sqrt(d_model), pos_emb)
# ---------------------------------------------------------------------------

def rel_pos_emb(t, d_model):
    """Centre slice of the RelPositionalEncoding pe buffer: (1, 2*t-1, d_model).

    Numerically identical to extend_pe() followed by the forward() slice
    pe[:, pe.size(1)//2 - t + 1 : pe.size(1)//2 + t].
    """
    pos = np.arange(t - 1, -t, -1, dtype=np.float32)          # t-1 .. -(t-1)
    div = np.exp(np.arange(0, d_model, 2, dtype=np.float32)
                 * -(math.log(10000.0) / d_model))
    pe = np.zeros((2 * t - 1, d_model), dtype=np.float32)
    pe[:, 0::2] = np.sin(pos[:, None] * div[None, :])
    pe[:, 1::2] = np.cos(pos[:, None] * div[None, :])
    return pe[None]                                            # (1, L, F)


def _scale_x_kernel(x_ref, o_ref, *, xscale):
    o_ref[...] = x_ref[...] * xscale


def rel_positional_encoding(x):
    """Pallas version of RelPositionalEncoding.forward (dropout = identity).

    Per the perf review the pe buffer (a registered constant) is returned
    directly instead of being round-tripped through VMEM; only the x * xscale
    scaling runs on-device.  When the result feeds the fused attention below,
    skip this kernel and pass the raw x with xscale=sqrt(d_model) instead
    (the scale is folded into that kernel).
    """
    B, T, F = x.shape
    xscale = math.sqrt(F)
    per_b = lambda b: (b, 0, 0)
    xs = pl.pallas_call(
        functools.partial(_scale_x_kernel, xscale=xscale),
        grid=(B,),
        in_specs=[pl.BlockSpec((1, T, F), per_b)],
        out_specs=pl.BlockSpec((1, T, F), per_b),
        out_shape=jax.ShapeDtypeStruct((B, T, F), jnp.float32),
        compiler_params=pltpu.CompilerParams(
            dimension_semantics=("parallel",)),
    )(x)
    # TODO(synk): dropout layers are identity (eval mode / dropout_rate = 0).
    return xs, jnp.asarray(rel_pos_emb(T, F))


# ---------------------------------------------------------------------------
# One-time probe of the strided-roll convention used for rel_shift
# ---------------------------------------------------------------------------

@functools.lru_cache(maxsize=1)
def _strided_roll_is_jnp_convention():
    """pltpu.roll(x, s, axis, stride=1, stride_axis=r) is expected to behave
    like jnp.roll with per-row shift s + i (row i along axis r).  Verify once
    on-device; if the convention differs (or the op fails to lower on this
    jax/libtpu) the callers fall back to the slice-based rel_shift."""
    try:
        def kern(x_ref, o_ref):
            o_ref[...] = pltpu.roll(x_ref[...], shift=0, axis=1,
                                    stride=1, stride_axis=0)

        x = jnp.arange(8 * 128, dtype=jnp.float32).reshape(8, 128)
        got = pl.pallas_call(
            kern, out_shape=jax.ShapeDtypeStruct((8, 128), jnp.float32))(x)
        want = jnp.stack([jnp.roll(x[i], i, axis=0) for i in range(8)])
        return bool(jnp.array_equal(jax.block_until_ready(got), want))
    except Exception:
        return False


# ---------------------------------------------------------------------------
# Fused relative-position cross multi-headed attention (single kernel)
# ---------------------------------------------------------------------------

def _fused_attn_kernel(q_ref, m_ref, mask_ref, ph_ref,
                       wq_ref, bq_ref, wkv_ref, bkv_ref,
                       pbu_ref, pbv_ref, wo_ref, bo_ref, g_ref, b_ref,
                       out_ref, *, n_head, d_k, t1, t2, xscale, use_roll):
    f32, bf16 = jnp.float32, jnp.bfloat16
    nf = n_head * d_k

    # ---- fold the RelPositionalEncoding scale into the fused kernel --------
    xq = q_ref[0] * xscale                                   # (T1, F) residual / query input
    xm = m_ref[0] * xscale                                   # (T2, F) shared key/value input

    # ---- projections: bf16 MXU operands, f32 accumulate, f32 biases --------
    q2 = jnp.dot(xq.astype(bf16), wq_ref[...],
                 preferred_element_type=f32) + bq_ref[...]    # (T1, F)
    kv = jnp.dot(xm.astype(bf16), wkv_ref[...],
                 preferred_element_type=f32) + bkv_ref[...]   # (T2, 2F) fused K|V
    k2 = kv[:, :nf]
    v2 = kv[:, nf:]

    # ---- head-major views (O(H) static lane slices; known-good lowering) ---
    def heads(z):
        return jnp.stack([z[:, h * d_k:(h + 1) * d_k] for h in range(n_head)],
                         axis=0)                              # (H, T, dk)

    qh = heads(q2)                                            # (H, T1, dk) f32
    kh = heads(k2).astype(bf16)                               # (H, T2, dk)
    vh = heads(v2).astype(bf16)                               # (H, T2, dk)
    qu = (qh + pbu_ref[...][:, None, :]).astype(bf16)         # + pos_bias_u
    qv = (qh + pbv_ref[...][:, None, :]).astype(bf16)         # + pos_bias_v

    # ---- batched score matmuls (batch-leading, bf16 operands) --------------
    ac = jnp.einsum("hqd,hkd->hqk", qu, kh,
                    preferred_element_type=f32)               # (H, T1, T2)
    bd = jnp.einsum("hqd,hld->hql", qv, ph_ref[...],
                    preferred_element_type=f32)               # (H, T1, Lp)

    # ---- rel_shift: row i keeps columns [t1-1-i, t1-1-i+t2) -----------------
    if use_roll:
        # one per-row-strided XLU rotate + one static lane slice
        bd_sh = pltpu.roll(bd, shift=0, axis=2, stride=1,
                           stride_axis=1)[:, :, t1 - 1:t1 - 1 + t2]
    else:
        # fallback: explicit per-row slices (matches the torch reshape trick)
        bd_sh = jnp.concatenate(
            [bd[:, i:i + 1, (t1 - 1 - i):(t1 - 1 - i + t2)] for i in range(t1)],
            axis=1)                                           # (H, T1, T2)

    scale = 1.0 / math.sqrt(d_k)
    scores = (jnp.clip(ac, -CLAMP, CLAMP) * scale
              + jnp.clip(bd_sh, -CLAMP, CLAMP) * scale)

    # ---- masking (torch-style: mask along the query axis, broadcast keys) --
    mq = (mask_ref[0] == 0)[None, :, :]                       # (1, T1, 1) bool
    scores = jnp.where(mq, F32_MIN, scores)

    # ---- softmax (f32, approx reciprocal on the EUP) ------------------------
    scores = scores - jnp.max(scores, axis=-1, keepdims=True)
    e = jnp.exp(scores)
    attn = e * pl.reciprocal(jnp.sum(e, axis=-1, keepdims=True), approx=True)
    attn = jnp.where(mq, 0.0, attn)
    # TODO(synk): attention dropout treated as identity (eval mode).

    # ---- context + merged per-head output projection ------------------------
    ctx = jnp.einsum("hqk,hkd->hqd", attn.astype(bf16), vh,
                     preferred_element_type=f32)              # (H, T1, dk)
    yh = jnp.einsum("hqd,hdf->hqf", ctx.astype(bf16), wo_ref[...],
                    preferred_element_type=f32)               # (H, T1, F)
    y = jnp.sum(yh, axis=0) + bo_ref[...]                     # merge heads (leading-axis sum)
    y = xq + y                                                # residual

    # ---- LayerNorm (f32) -----------------------------------------------------
    mu = jnp.mean(y, axis=-1, keepdims=True)
    var = jnp.mean((y - mu) ** 2, axis=-1, keepdims=True)
    yn = (y - mu) * lax.rsqrt(var + LN_EPS)
    out_ref[0] = yn * g_ref[...] + b_ref[...]


def rel_position_cross_mha(query, memory, pos_emb, mask, params, n_head,
                           xscale=1.0):
    """Fused rel-position cross MHA.  `query`/`memory` are the *unscaled*
    pos-enc inputs; xscale (= sqrt(d_model)) is applied in-kernel.  `memory`
    is the shared key/value tensor (K and V projections are fused)."""
    B, T1, F = query.shape
    T2 = memory.shape[1]
    d_k = F // n_head
    L = pos_emb.shape[1]
    assert F % n_head == 0
    assert L == 2 * T2 - 1, "pos_emb must cover relative positions of the key axis"
    assert T1 <= T2, "in-kernel rel_shift assumes T1 <= T2 (matches the torch trick)"

    f32, bf16 = jnp.float32, jnp.bfloat16

    # ---- batch-invariant position projection, hoisted out of the grid ------
    # (done once here instead of B times in-kernel; padded to a lane-dense
    #  multiple of 128 — padded rows are zero and never read by rel_shift)
    Lp = max(128, ((L + 127) // 128) * 128)
    p = pos_emb[0].astype(f32) @ params["WposT"].astype(f32)              # (L, F)
    p = p.reshape(L, n_head, d_k).transpose(1, 0, 2)                      # (H, L, dk)
    ph = jnp.zeros((n_head, Lp, d_k), bf16).at[:, :L, :].set(p.astype(bf16))

    # ---- weight packing: bf16 MXU operands, fused K|V, per-head out-proj ----
    wq = params["WqT"].astype(bf16)                                       # (F, F)
    wkv = jnp.concatenate([params["WkT"], params["WvT"]], axis=1).astype(bf16)
    bkv = jnp.concatenate([params["bk"], params["bv"]], axis=1)           # (1, 2F)
    wo = params["WoutT"].reshape(n_head, d_k, F).astype(bf16)             # (H, dk, F)

    mask_q = jnp.transpose(mask.astype(jnp.int32), (0, 2, 1))             # (B, T1, 1)

    per_b = lambda b: (b, 0, 0)
    c2 = lambda b: (0, 0)
    c3 = lambda b: (0, 0, 0)

    def call(optimized, use_roll):
        single = pl.Buffered(1) if optimized else None

        def const_spec(shape, imap):
            # constant-index blocks: single-buffer them (no pipelining benefit)
            if single is None:
                return pl.BlockSpec(shape, imap)
            return pl.BlockSpec(shape, imap, pipeline_mode=single)

        in_specs = [
            pl.BlockSpec((1, T1, F), per_b),        # query (also residual input)
            pl.BlockSpec((1, T2, F), per_b),        # memory (key == value input)
            pl.BlockSpec((1, T1, 1), per_b),        # mask, (B, T1, 1) int32
            const_spec((n_head, Lp, d_k), c3),      # hoisted pos projection
            const_spec((F, F), c2),                 # WqT (bf16)
            const_spec((1, F), c2),                 # bq
            const_spec((F, 2 * F), c2),             # [WkT | WvT] (bf16)
            const_spec((1, 2 * F), c2),             # [bk | bv]
            const_spec((n_head, d_k), c2),          # pos_bias_u
            const_spec((n_head, d_k), c2),          # pos_bias_v
            const_spec((n_head, d_k, F), c3),       # Wout as (H, dk, F) (bf16)
            const_spec((1, F), c2),                 # bout
            const_spec((1, F), c2),                 # ln gamma
            const_spec((1, F), c2),                 # ln beta
        ]
        out = pl.pallas_call(
            functools.partial(_fused_attn_kernel, n_head=n_head, d_k=d_k,
                              t1=T1, t2=T2, xscale=xscale, use_roll=use_roll),
            grid=(B,),
            in_specs=in_specs,
            out_specs=pl.BlockSpec((1, T1, F), per_b),
            out_shape=jax.ShapeDtypeStruct((B, T1, F), jnp.float32),
            compiler_params=pltpu.CompilerParams(
                dimension_semantics=("parallel",),
                # ~56 MiB headroom target on v7x; can be raised on v5e/v6e
                vmem_limit_bytes=48 * 1024 * 1024),
        )(query, memory, mask_q, ph, wq, params["bq"], wkv, bkv,
          params["pos_bias_u"], params["pos_bias_v"], wo, params["bout"],
          params["gamma"], params["beta"])
        return jax.block_until_ready(out)

    # TODO(synk): for long sequences add a T1 ("parallel") grid axis and stream
    # K/V flash-style over T2 (online softmax) so the (H, T1, Lp) bd block fits
    # v7x's 64 MiB VMEM; also add a second parallel axis when B == 1 so both
    # v7x TensorCores stay busy.
    try:
        return call(optimized=True, use_roll=_strided_roll_is_jnp_convention())
    except Exception:
        # Conservative rebuild (default buffering, slice-based rel_shift) keeps
        # the script runnable across jax/libtpu versions; result is still
        # verified against the reference below.
        return call(optimized=False, use_roll=False)


# ---------------------------------------------------------------------------
# numpy reference (mirrors the torch forward exactly, incl. the reshape-trick
# rel_shift and the query-axis mask broadcasting); f32 throughout
# ---------------------------------------------------------------------------

def reference_forward(query, memory, pos_emb, mask, P, n_head):
    query, memory, mask, pos_emb = map(np.asarray, (query, memory, mask, pos_emb))
    B, T1, F = query.shape
    T2 = memory.shape[1]
    dk = F // n_head

    def lin(x, Wt, b=None):
        y = x @ np.asarray(Wt)
        return y if b is None else y + np.asarray(b)

    def split_heads(x, T):
        return x.reshape(-1, T, n_head, dk).transpose(0, 2, 1, 3)

    q = split_heads(lin(query, P["WqT"], P["bq"]), T1)
    k = split_heads(lin(memory, P["WkT"], P["bk"]), T2)
    v = split_heads(lin(memory, P["WvT"], P["bv"]), T2)
    p = split_heads(lin(pos_emb, P["WposT"]), pos_emb.shape[1])   # (1,H,L,dk)

    q_t = q.transpose(0, 2, 1, 3)
    qu = (q_t + np.asarray(P["pos_bias_u"])).transpose(0, 2, 1, 3)
    qv = (q_t + np.asarray(P["pos_bias_v"])).transpose(0, 2, 1, 3)

    ac = qu @ np.swapaxes(k, -2, -1)
    bd = qv @ np.swapaxes(p, -2, -1)

    # torch rel_shift (zero-pad + reshape + slice)
    Bb, H, _, Lb = bd.shape
    zp = np.zeros((Bb, H, T1, 1), bd.dtype)
    xp = np.concatenate([zp, bd], axis=-1).reshape(Bb, H, Lb + 1, T1)
    bd = xp[:, :, 1:, :].reshape(Bb, H, T1, Lb)[:, :, :, : Lb // 2 + 1]

    ac = np.clip(ac, -CLAMP, CLAMP) / math.sqrt(dk)
    bd = np.clip(bd, -CLAMP, CLAMP) / math.sqrt(dk)
    scores = ac + bd

    m = np.broadcast_to(mask[:, :, :, None] == 0, scores.shape)
    scores = np.where(m, F32_MIN, scores)
    scores = scores - scores.max(-1, keepdims=True)
    e = np.exp(scores)
    attn = e / e.sum(-1, keepdims=True)
    attn = np.where(m, 0.0, attn)

    x = (attn @ v).transpose(0, 2, 1, 3).reshape(B, T1, F)
    y = lin(x, P["WoutT"], P["bout"]) + query
    mu = y.mean(-1, keepdims=True)
    var = ((y - mu) ** 2).mean(-1, keepdims=True)
    yn = (y - mu) / np.sqrt(var + LN_EPS)
    return yn * np.asarray(P["gamma"]) + np.asarray(P["beta"])


# ----------------------------------------------------------------------- main

if __name__ == "__main__":
    # lane-dense d_model (review: F multiple of 128); small otherwise
    B, T, F, H = 2, 8, 128, 4
    d_k = F // H

    root = jax.random.PRNGKey(0)
    ks = jax.random.split(root, 16)

    def w(k, shape, fan_in):
        return jax.random.normal(k, shape, jnp.float32) / math.sqrt(fan_in)

    params = {
        "WqT":   w(ks[0], (F, F), F),          # pre-transposed: [in, out]
        "bq":    w(ks[1], (1, F), F),
        "WkT":   w(ks[2], (F, F), F),
        "bk":    w(ks[3], (1, F), F),
        "WvT":   w(ks[4], (F, F), F),
        "bv":    w(ks[5], (1, F), F),
        "WposT": w(ks[6], (F, F), F),
        "pos_bias_u": w(ks[7], (H, d_k), d_k),
        "pos_bias_v": w(ks[8], (H, d_k), d_k),
        "WoutT": w(ks[9], (F, F), F),
        "bout":  w(ks[10], (1, F), F),
        "gamma": jnp.ones((1, F), jnp.float32),
        "beta":  jnp.zeros((1, F), jnp.float32),
    }

    # modest input scale keeps attention logits O(1) so the bf16-MXU-operand
    # kernel vs. f32 reference comparison below is well conditioned
    x = jax.random.normal(ks[11], (B, T, F), jnp.float32) / math.sqrt(F)
    lengths = jnp.array([T, T - 2], jnp.int32)
    mask = (jnp.arange(T)[None, :] < lengths[:, None]).astype(jnp.int32)[:, None, :]  # (B,1,T)

    # ---- kernel 1: RelPositionalEncoding.forward (the module itself) -------
    x_scaled, pos_emb = rel_positional_encoding(x)
    x_scaled = jax.block_until_ready(x_scaled)
    if not np.allclose(np.asarray(x_scaled), np.asarray(x) * math.sqrt(F),
                       rtol=1e-5, atol=1e-5):
        raise AssertionError("pos-enc scaled-x output does not match reference")
    if pos_emb.shape != (1, 2 * T - 1, F) or not np.allclose(
            np.asarray(pos_emb), rel_pos_emb(T, F), rtol=1e-5, atol=1e-5):
        raise AssertionError("pos-enc pos_emb output does not match reference")

    # ---- kernel 2: fused rel-position cross attention consuming pos_emb ----
    # (raw x in, sqrt(d_model) scale folded in-kernel per the perf review)
    out = rel_position_cross_mha(x, x, pos_emb, mask, params, n_head=H,
                                 xscale=math.sqrt(F))
    out = jax.block_until_ready(out)

    ref = reference_forward(np.asarray(x) * math.sqrt(F),
                            np.asarray(x) * math.sqrt(F),
                            pos_emb, mask, params, H)
    # tolerance widened vs. the pure-f32 reference because the kernel uses
    # bf16 MXU operands (f32 accumulation), per the performance review
    if not np.allclose(np.asarray(out), ref, rtol=2e-2, atol=2e-2):
        max_err = float(np.max(np.abs(np.asarray(out) - ref)))
        raise AssertionError(
            f"Pallas attention output does not match reference (max abs err {max_err:.4e})")

    print("KERNEL_OK")
</pallas_src>

<mosaic_0001>
module attributes {stable_mosaic.version = 11 : i64} {
  func.func @_scale_x_kernel(%arg0: i32, %arg1: memref<1x8x128xf32, #tpu.memory_space<vmem>>, %arg2: memref<1x8x128xf32, #tpu.memory_space<vmem>>) attributes {dimension_semantics = [#tpu.dimension_semantics<parallel>], iteration_bounds = array<i64: 2>, scalar_prefetch = 0 : i64, scratch_operands = 0 : i64, tpu.core_type = #tpu.core_type<tc>, window_params = [{transform_indices = @transform_0, window_bounds = array<i64: 1, 8, 128>}, {transform_indices = @transform_1, window_bounds = array<i64: 1, 8, 128>}]} {
    %c0 = arith.constant 0 : index
    %c0_0 = arith.constant 0 : index
    %c0_1 = arith.constant 0 : index
    %0 = vector.load %arg1[%c0, %c0_0, %c0_1] : memref<1x8x128xf32, #tpu.memory_space<vmem>>, vector<1x8x128xf32>
    %cst = arith.constant 11.3137083 : f32
    %1 = vector.broadcast %cst : f32 to vector<1x8x128xf32>
    %2 = arith.mulf %0, %1 : vector<1x8x128xf32>
    %c0_2 = arith.constant 0 : index
    %c0_3 = arith.constant 0 : index
    %c0_4 = arith.constant 0 : index
    %3 = vector.load %arg2[%c0_2, %c0_3, %c0_4] : memref<1x8x128xf32, #tpu.memory_space<vmem>>, vector<1x8x128xf32>
    tpu.vector_store %arg2[%c0_2, %c0_3, %c0_4], %2 {strides = array<i32>} : memref<1x8x128xf32, #tpu.memory_space<vmem>>, vector<1x8x128xf32>,
    return
  }
  func.func @transform_0(%arg0: i32) -> (i32, i32, i32) {
    %c0_i32 = arith.constant 0 : i32
    %c0_i32_0 = arith.constant 0 : i32
    %c0_i32_1 = arith.constant 0 : i32
    return %arg0, %c0_i32, %c0_i32_0 : i32, i32, i32
  }
  func.func @transform_1(%arg0: i32) -> (i32, i32, i32) {
    %c0_i32 = arith.constant 0 : i32
    %c0_i32_0 = arith.constant 0 : i32
    %c0_i32_1 = arith.constant 0 : i32
    return %arg0, %c0_i32, %c0_i32_0 : i32, i32, i32
  }
}

</mosaic_0001>

<bundles_post_ra>
// kernel: tpu_custom_call.1
= control target key start
LH: loop header
LB: loop body
LE: loop exit
PB: predicated region body
PF: predicated region fallthrough
CT: control target
= control target key end

     0   :  { %6 = vsyncpa [#allocation3], 0  ;;  %s548_s0 = inlined_call_operand.hbm [shape: f32[2,8,128], index: 0, kind: input, shape index: {}]   ;;  %s549_s1 = inlined_call_operand.hbm [shape: f32[2,8,128], index: 1, kind: output, shape index: {}]  }
   0x1   :  { %8 = vsyncpa [#allocation3 + $0x1], 0 }
   0x2   :  { %9 = vsyncpa [#allocation4], 0 }
   0x3   :  { %11 = vsyncpa [#allocation4 + $0x1], 0  ;;  %s387_s6 = smov 0   ;;  %s389_s7 = smov 0  }
   0x4   :  { %s391_s8 = smov 0   ;;  %s393_s9 = smov 0  }
   0x5 LB: > { %s408_s10 = sadd.s32 4294967295, %s373_s9   ;;  %s219_s11 = sadd.s32 4294967294, %s373_s9   ;;  %s373_s9 = sphi %s393_s9, %s564_s9   ;;  %s369_s8 = sphi %s391_s8, %s563_s8   ;;  %s365_s7 = sphi %s389_s7, %s562_s7   ;;  %s361_s6 = sphi %s387_s6, %s561_s6  }
   0x6   : > { %s412_s12 = sadd.s32 1, %s373_s9   ;;  %s24_s13 = sadd.s32 1, %s369_s8 }
   0x7   : > { %s21_s14 = ssub.s32 %s373_s9, %s412_s12  ;;  %p31_p0 = scmp.ne.s32.totalorder %s369_s8, %s365_s7 }
   0x8   : > { %p22_p1 = scmp.eq.s32.totalorder %s21_s14, 0  ;;  %p32_p2 = scmp.eq.s32.totalorder %s373_s9, 0 }
   0x9   : > { %p37_p3 = scmp.ne.s32.totalorder %s365_s7, %s361_s6  ;;  %p38_p4 = scmp.eq.s32.totalorder %s408_s10, 0 }
   0xa   : > { %s424_s15 = scalar_select %p22_p1, %s369_s8, %s24_s13  }
   0xb   : > { %p426_p5 = por %p32_p2, %p31_p0  ;;  %p430_p6 = por %p38_p4, %p37_p3 }
   0xc   : > { %p61_p7 = scmp.eq.s32.totalorder %s408_s10, 1  ;;  %p67_p8 = scmp.eq.s32.totalorder %s219_s11, 1 }
   0xd   : > { %p243_p10 = scmp.lt.s32.totalorder %s373_s9, 2  ;;  %s87_s20 = sand.u32 1, %s369_s8  }
   0xe   : > { %p437_p11 = por %p61_p7, %p31_p0  ;;  %p441_p12 = por %p67_p8, %p37_p3 }
   0xf   : > { %s223_s21 = sshll.u32 %s373_s9, 7  ;;  %s222_s22 = sshll.u32 %s87_s20, 3 }
  0x10   : > { %s553_s18 = scalar_select %p437_p11, 1, 0 }
  0x11   : > { %s554_s19 = scalar_select %p441_p12, 1, 0 }
  0x12   : > { %s450_s25 = scalar_lea.hbm %s548_s0, %s223_s21  ;;  %s91_s26 = scalar_lea.vmem [#allocation2], %s222_s22 }
  0x13   : > { %s98_s27 = sshll.u32 %s91_s26, 4  ;;  %p454_p13 = pnand %p243_p10, %p426_p5  ;;  %s458_s27 = int_to_ptr.vmem [resolvable:$true] %s98_s27 }
  0x14   : > { %s88_s29 = scalar_lea.sflag [#allocation3], %s87_s20  ;;  %s277_s30 = scalar_lea.hbm %s450_s25, 128 }
  0x15   : > { %p278_p2 = scmp.ne.s32.totalorder %s450_s25, %s277_s30  ;;  %p279_p3 = pneg %p454_p13 }
  0x16   : > { %s282_s4 = scalar_lea.hbm %s548_s0, 256  ;;  %p283_p5 = scmp.lt.u32.totalorder %s450_s25, %s548_s0 }
  0x17   : > { %p280_p4 = pnand %p279_p3, %p278_p2  ;;  %p284_p8 = scmp.lt.u32.totalorder %s282_s4, %s277_s30 }
  0x18   : > { %p286_p9 = scmp.lt.u32.totalorder %s277_s30, %s450_s25 }
  0x19   : > { %p281_p7 = pneg %p280_p4  ;;  %p285_p10 = por %p284_p8, %p283_p5 }
  0x1b   : > { %p287_p0 = por %p286_p9, %p285_p10 }
  0x1d   : > { %p288_p1 = pnand %p287_p0, %p281_p7 }
  0x1f   : > { %291 = shalt.err (!%p288_p1)
}
  0x20   : > { %s292_s13 = scalar_lea.vmem %s458_s27, 128  ;;  %s375_s14 = smov [#allocation2]  }
  0x21   : > { %p293_p2 = scmp.ne.s32.totalorder %s458_s27, %s292_s13  ;;  %s297_s16 = sshll.u32 %s375_s14, 4  ;;  %s298_s16 = int_to_ptr.vmem [resolvable:$false] %s297_s16 }
  0x22   : > { %s299_s20 = scalar_lea.vmem %s298_s16, 256  ;;  %p300_p11 = scmp.lt.s32.totalorder %s458_s27, %s298_s16 }
  0x23   : > { %p295_p4 = pnand %p293_p2, %p279_p3  ;;  %p301_p5 = scmp.lt.s32.totalorder %s299_s20, %s292_s13 }
  0x25   : > { %p296_p12 = pneg %p295_p4  ;;  %p302_p8 = por %p301_p5, %p300_p11 }
  0x27   : > { %p303_p9 = pnand %p302_p8, %p296_p12 }
  0x29   : > { %306 = shalt.err (!%p303_p9)
}
  0x2a   : > { %238 = dma.hbm_to_vmem [thread:$0]  (!%p454_p13), %s450_s25, 128, %s458_s27, %s88_s29  }
  0x2b   : > { %p556_p0 = scmp.lt.s32.totalorder %s373_s9, 3  ;;  %p557_p1 = scmp.ge.s32.totalorder %s373_s9, 1 }
  0x2d   : > { %p104_p3 = pnand %p557_p1, %p556_p0 }
  0x2e   : > { %s492_s21 = sand.u32 (!%p104_p3), 1, %s365_s7  }
  0x2f   : > { %107 = sbr.rel (%p104_p3) target bundleno = 81 (0x51), region = 24  ;;  %s225_s22 = sshll.u32 (!%p104_p3), %s492_s21, 3 }
  0x30   : > { %s110_s23 = scalar_lea.sflag (!%p104_p3), [#allocation3], %s492_s21  ;;  %s113_s24 = scalar_lea.vmem (!%p104_p3), [#allocation2], %s225_s22 }
  0x36   : > { %352 = dma.done.wait (%p430_p6), %s110_s23, 128  }
  0x37   : > { %354 = vsyncadd (%p430_p6), %s110_s23, 4294967168  ;;  %s131_s25 = scalar_lea.vmem [#allocation5], %s225_s22  ;;  %s228_s27 = sshll.u32 %s408_s10, 7  ;;  %v132_v0 = vld [vmem:[%s113_s24] sm:$0xff] }
  0x38   : > { %s149_s26 = sshll.u32 %s131_s25, 4  ;;  %v133_v1 = vmul.f32 11.313708, %v132_v0  ;;  %s506_s30 = scalar_lea.hbm %s549_s1, %s228_s27  ;;  %s501_s26 = int_to_ptr.vmem [resolvable:$true] %s149_s26 }
  0x39   : > { %s136_s17 = scalar_lea.sflag [#allocation4], %s492_s21  ;;  %s307_s2 = scalar_lea.vmem %s501_s26, 128 }
  0x3a   : > { %134 = vst [vmem:[%s131_s25] sm:$0xff] %v133_v1  ;;  %p308_p6 = scmp.ne.s32.totalorder %s501_s26, %s307_s2  ;;  %p558_p11 = scmp.ne.s32.totalorder %s553_s18, 0 }
  0x3b   : > { %s376_s10 = smov [#allocation5]  }
  0x3c   : > { %p309_p12 = pnand %p308_p6, %p558_p11  ;;  %s311_s3 = sshll.u32 %s376_s10, 4  ;;  %s312_s3 = int_to_ptr.vmem [resolvable:$false] %s311_s3 }
  0x3d   : > { %s313_s4 = scalar_lea.vmem %s312_s3, 256  ;;  %p314_p7 = scmp.lt.s32.totalorder %s501_s26, %s312_s3 }
  0x3e   : > { %p310_p13 = pneg %p309_p12  ;;  %p315_p10 = scmp.lt.s32.totalorder %s313_s4, %s307_s2 }
  0x40   : > { %p316_p2 = por %p315_p10, %p314_p7 }
  0x42   : > { %p317_p4 = pnand %p316_p2, %p310_p13 }
  0x44   : > { %320 = shalt.err (!%p317_p4)
}
  0x45   : > { %s321_s5 = scalar_lea.hbm %s506_s30, 128  ;;  %s325_s14 = scalar_lea.hbm %s549_s1, 256 }
  0x46   : > { %p322_p5 = scmp.ne.s32.totalorder %s506_s30, %s321_s5  ;;  %p326_p0 = scmp.lt.u32.totalorder %s506_s30, %s549_s1 }
  0x47   : > { %p327_p1 = scmp.lt.u32.totalorder %s325_s14, %s321_s5  ;;  %p329_p6 = scmp.lt.u32.totalorder %s321_s5, %s506_s30 }
  0x48   : > { %p323_p8 = pnand %p322_p5, %p558_p11 }
  0x49   : > { %p328_p3 = por %p327_p1, %p326_p0 }
  0x4a   : > { %p324_p9 = pneg %p323_p8 }
  0x4b   : > { %p330_p12 = por %p329_p6, %p328_p3 }
  0x4d   : > { %p331_p13 = pnand %p330_p12, %p324_p9 }
  0x4f   : > { %334 = shalt.err (!%p331_p13)
}
  0x50   : > { %233 = dma.vmem_to_hbm [thread:$0]  (%p558_p11), %s501_s26, 128, %s506_s30, %s136_s17  }
  0x51 PF: > { %s161_s21 = sand.u32 1, %s361_s6   ;;  %p559_p7 = scmp.ne.s32.totalorder %s554_s19, 0 }
  0x52   : > { %p560_p10 = scmp.ge.s32.totalorder %s373_s9, 2  ;;  %s162_s22 = scalar_lea.sflag [#allocation4], %s161_s21 }
  0x54   : > { %p240_p2 = pnand %p560_p10, %p559_p7 }
  0x56   : > { %356 = dma.done.wait (!%p240_p2), %s162_s22, 128  }
  0x57   : > { %358 = vsyncadd (!%p240_p2), %s162_s22, 4294967168  ;;  %p14_p4 = scmp.ge.s32.totalorder %s412_s12, 4   ;;  %s561_s6 = smov %s365_s7 }
  0x58   : > { %s562_s7 = smov %s369_s8  ;;  %s563_s8 = smov %s424_s15 }
  0x59   : > { %s564_s9 = smov %s412_s12  ;;  %16 = sbr.rel (!%p14_p4) target bundleno = 5 (0x5), region = 69 }
  0x60   :  { %167 = vsyncpa [#allocation3], 1 }
  0x61   :  { %169 = vsyncpa [#allocation3 + $0x1], 1 }
  0x62   :  { %170 = vsyncpa [#allocation4], 1 }
  0x63   :  { %172 = vsyncpa [#allocation4 + $0x1], 1 }

</bundles_post_ra>
